<compile_context>
chip_gen: v5e
topology: v5e:2x2
jax: 0.10.0
libtpu: 0.0.40
codegen_flags: <defaults>
</compile_context>

<pallas_src>
import functools

import jax
import jax.numpy as jnp
from jax.experimental import pallas as pl
from jax.experimental.pallas import tpu as pltpu


def _round_up(x: int, m: int) -> int:
    return ((x + m - 1) // m) * m


def _fused_mlp_kernel(*refs, n_hidden: int):
    """refs = (x_ref, w0, b0, ..., w_{n-1}, b_{n-1}, w_mu, b_mu, o_ref).

    Computes tanh(W_mu softplus(W_{n-1} ... softplus(W_0 x + b_0) ...) + b_mu)
    entirely in VMEM / vregs for one batch tile.
    """
    x_ref = refs[0]
    o_ref = refs[-1]
    wb = refs[1:-1]

    h = x_ref[...].astype(jnp.float32)
    for i in range(n_hidden + 1):
        w_ref, b_ref = wb[2 * i], wb[2 * i + 1]
        # bf16 operands into the MXU, f32 accumulation; bias/activation stay f32.
        y = jnp.dot(h.astype(w_ref.dtype), w_ref[...],
                    preferred_element_type=jnp.float32) + b_ref[...]
        if i < n_hidden:
            # torch.nn.Softplus(beta=1, threshold=20): y if y > 20 else log1p(exp(y)).
            # No clamp needed: the where selects y on the large branch; inf in the
            # unselected branch never leaks into selected lanes.
            h = jnp.where(y > 20.0, y, jnp.log1p(jnp.exp(y)))
        else:
            o_ref[...] = jnp.tanh(y).astype(o_ref.dtype)


def mlp_forward(params, x, *, batch_tile: int = 512):
    """Single fused pallas_call for the whole MLP forward.

    params: dict produced by prep_kernel_params:
      "latent_pi": list of (w_t: [Kp_i, Np_i] bf16, b: [1, Np_i] f32)  (padded, (in,out))
      "mu":        (w_t: [Kp, Np] bf16, b: [1, Np] f32)
      "out_dim":   true (unpadded) output width
    x: [B, Din] (kept at native Din; only layer OUTPUT widths are lane-padded)
    """
    B, Din = x.shape
    hidden = params["latent_pi"]
    w_mu_t, b_mu = params["mu"]
    Dout = params["out_dim"]
    Dout_p = w_mu_t.shape[1]
    n_hidden = len(hidden)
    layers = list(hidden) + [(w_mu_t, b_mu)]

    # Batch tile: multiple of 8 sublanes; the last (possibly partial) tile is handled
    # by Pallas block masking, so no wrapper-side jnp.pad / slice of x is needed.
    if B <= batch_tile:
        bt = B                      # single tile; full-dim block is always legal
    else:
        bt = max(8, (batch_tile // 8) * 8)
    grid = (pl.cdiv(B, bt),)

    itemsize = x.dtype.itemsize
    weight_bytes = sum(int(w.size) * w.dtype.itemsize + int(b.size) * b.dtype.itemsize
                       for (w, b) in layers)
    # Guard: the fused design keeps the whole (single-buffered) weight set resident in
    # per-TensorCore VMEM (64 MiB on v7x, duplicated per core with a "parallel" grid).
    if weight_bytes > (40 << 20):
        # TODO(synk): fall back to tiling the widest layer's N dim with an extra
        # "arbitrary" grid axis + f32 accumulator scratch instead of full residency.
        raise NotImplementedError(
            "weight set too large for the fused VMEM-resident MLP kernel")

    max_w = max([w.shape[1] for (w, _) in layers] + [Din])
    # footprint: resident weights + double-buffered x/out tiles + f32 intermediates.
    need = (weight_bytes
            + 2 * bt * (Din + Dout_p) * itemsize
            + 4 * bt * max_w * 4)
    vmem_limit = int(min(max(2 * need, 32 << 20), 56 << 20))

    flops = int(2 * B * sum(w.shape[0] * w.shape[1] for (w, _) in layers))
    transcendentals = int(B * (2 * sum(w.shape[1] for (w, _) in hidden) + Dout_p))
    bytes_accessed = int(B * Din * itemsize + weight_bytes + B * Dout_p * itemsize)

    # x is streamed per batch tile (double-buffered); weights/biases are full blocks
    # pinned at (0, 0) and single-buffered, so they stay VMEM-resident across grid steps.
    const_buf = pl.Buffered(1)
    in_specs = [pl.BlockSpec((bt, Din), lambda i: (i, 0))]
    flat_wb = []
    for (w_t, b2) in layers:
        flat_wb.append(w_t)
        flat_wb.append(b2)
        in_specs.append(pl.BlockSpec(w_t.shape, lambda i: (0, 0), pipeline_mode=const_buf))
        in_specs.append(pl.BlockSpec(b2.shape, lambda i: (0, 0), pipeline_mode=const_buf))

    kernel = functools.partial(_fused_mlp_kernel, n_hidden=n_hidden)
    out = pl.pallas_call(
        kernel,
        grid=grid,
        in_specs=in_specs,
        out_specs=pl.BlockSpec((bt, Dout_p), lambda i: (i, 0)),
        out_shape=jax.ShapeDtypeStruct((B, Dout_p), x.dtype),
        compiler_params=pltpu.CompilerParams(
            # Batch tiles are independent -> shard across TensorCores on v7x.
            dimension_semantics=("parallel",),
            vmem_limit_bytes=vmem_limit,
        ),
        cost_estimate=pl.CostEstimate(
            flops=flops, transcendentals=transcendentals,
            bytes_accessed=bytes_accessed),
    )(x, *flat_wb)
    return out[:, :Dout] if Dout_p != Dout else out


def init_mlp_params(key, in_shape, dims, out_shape, dtype=jnp.float32):
    """Deterministic init mimicking nn.Linear shapes (weight: (out, in), bias: (out,))."""
    params = {"latent_pi": [], "mu": None, "log_std": None}
    layer_dims = [in_shape] + list(dims)
    for i in range(len(dims)):
        fan_in, fan_out = layer_dims[i], layer_dims[i + 1]
        key, kw, kb = jax.random.split(key, 3)
        bound = 1.0 / jnp.sqrt(fan_in)
        w = jax.random.uniform(kw, (fan_out, fan_in), dtype, -bound, bound)
        b = jax.random.uniform(kb, (fan_out,), dtype, -bound, bound)
        params["latent_pi"].append((w, b))
    for name in ("mu", "log_std"):
        fan_in, fan_out = dims[-1], out_shape
        key, kw, kb = jax.random.split(key, 3)
        bound = 1.0 / jnp.sqrt(fan_in)
        w = jax.random.uniform(kw, (fan_out, fan_in), dtype, -bound, bound)
        b = jax.random.uniform(kb, (fan_out,), dtype, -bound, bound)
        params[name] = (w, b)
    return params


def prep_kernel_params(params, weight_dtype=jnp.bfloat16, lane_multiple=128):
    """One-time layout prep (outside the forward path).

    * transpose weights to (in, out)
    * zero-pad every layer's OUTPUT width (and the next layer's input rows) to a
      multiple of `lane_multiple` (128 lanes; use 256 on v6e if hidden widths >= 256)
    * cast weights to bf16 (MXU-native), keep biases in f32 (negligible bytes,
      preserves numerics), reshape biases to (1, out)
    Zero-padded weight rows guarantee the padded h columns (softplus(0) = log 2)
    contribute nothing, so padding is numerically exact.
    log_std is intentionally not carried: unused in forward(), matching the reference.
    """
    hidden = params["latent_pi"]
    w_mu, b_mu = params["mu"]
    layers = [(jnp.asarray(w), jnp.asarray(b)) for (w, b) in list(hidden) + [(w_mu, b_mu)]]

    prepped = []
    prev_pad = 0  # zero rows appended so K matches the previous layer's padded width
    for (w, b) in layers:
        n_out, _ = w.shape
        n_out_p = _round_up(n_out, lane_multiple)
        w_t = jnp.pad(w.T, ((0, prev_pad), (0, n_out_p - n_out)))
        b_p = jnp.pad(b, (0, n_out_p - n_out)).reshape(1, n_out_p)
        prepped.append((w_t.astype(weight_dtype), b_p.astype(jnp.float32)))
        prev_pad = n_out_p - n_out
    return {"latent_pi": prepped[:-1], "mu": prepped[-1],
            "out_dim": int(layers[-1][0].shape[0])}


if __name__ == "__main__":
    in_shape, dims, out_shape = 16, [32, 32], 8
    batch = 20  # not a multiple of the tile -> exercises the masked partial last block

    key = jax.random.PRNGKey(0)
    key, kx = jax.random.split(key)
    x = jax.random.normal(kx, (batch, in_shape), jnp.float32)

    torch_like_params = init_mlp_params(key, in_shape, dims, out_shape)
    params = prep_kernel_params(torch_like_params)  # pad/transpose/cast once

    # Small batch tile so grid=(3,) with a ragged last tile is actually exercised.
    out = mlp_forward(params, x, batch_tile=8)
    out = jax.block_until_ready(out)
    assert out.shape == (batch, out_shape)

    # Reference 1: exactly the kernel's math (padded bf16 weights, f32 accum) in pure JAX.
    def ref_prepped(p, xv):
        h = xv.astype(jnp.float32)
        for (w, b) in p["latent_pi"]:
            y = jnp.dot(h.astype(w.dtype), w, preferred_element_type=jnp.float32) + b
            h = jnp.where(y > 20.0, y, jnp.log1p(jnp.exp(y)))
        w, b = p["mu"]
        y = jnp.dot(h.astype(w.dtype), w, preferred_element_type=jnp.float32) + b
        return jnp.tanh(y)[:, :p["out_dim"]]

    # Reference 2: the original torch-semantics f32 forward (parity with nn.Module).
    def ref_f32(p, xv):
        h = xv
        for (w, b) in p["latent_pi"]:
            y = h @ w.T + b
            h = jnp.where(y > 20.0, y, jnp.log1p(jnp.exp(jnp.minimum(y, 20.0))))
        w_mu, b_mu = p["mu"]
        return jnp.tanh(h @ w_mu.T + b_mu)

    assert jnp.allclose(out, ref_prepped(params, x), atol=1e-3, rtol=1e-3)
    assert jnp.allclose(out, ref_f32(torch_like_params, x), atol=5e-2, rtol=5e-2)

    print("KERNEL_OK")
</pallas_src>

<mosaic_0001>
module attributes {stable_mosaic.version = 11 : i64} {
  func.func @_fused_mlp_kernel(%arg0: i32, %arg1: memref<8x16xf32, #tpu.memory_space<vmem>>, %arg2: memref<16x128xbf16, #tpu.memory_space<vmem>>, %arg3: memref<1x128xf32, #tpu.memory_space<vmem>>, %arg4: memref<128x128xbf16, #tpu.memory_space<vmem>>, %arg5: memref<1x128xf32, #tpu.memory_space<vmem>>, %arg6: memref<128x128xbf16, #tpu.memory_space<vmem>>, %arg7: memref<1x128xf32, #tpu.memory_space<vmem>>, %arg8: memref<8x128xf32, #tpu.memory_space<vmem>>) attributes {dimension_semantics = [#tpu.dimension_semantics<parallel>], iteration_bounds = array<i64: 3>, scalar_prefetch = 0 : i64, scratch_operands = 0 : i64, tpu.core_type = #tpu.core_type<tc>, window_params = [{transform_indices = @transform_0, window_bounds = array<i64: 8, 16>}, {pipeline_mode = #tpu.pipeline_mode<synchronous>, transform_indices = @transform_1, window_bounds = array<i64: 16, 128>}, {pipeline_mode = #tpu.pipeline_mode<synchronous>, transform_indices = @transform_2, window_bounds = array<i64: 1, 128>}, {pipeline_mode = #tpu.pipeline_mode<synchronous>, transform_indices = @transform_3, window_bounds = array<i64: 128, 128>}, {pipeline_mode = #tpu.pipeline_mode<synchronous>, transform_indices = @transform_4, window_bounds = array<i64: 1, 128>}, {pipeline_mode = #tpu.pipeline_mode<synchronous>, transform_indices = @transform_5, window_bounds = array<i64: 128, 128>}, {pipeline_mode = #tpu.pipeline_mode<synchronous>, transform_indices = @transform_6, window_bounds = array<i64: 1, 128>}, {transform_indices = @transform_7, window_bounds = array<i64: 8, 128>}]} {
    %c0 = arith.constant 0 : index
    %c0_0 = arith.constant 0 : index
    %0 = vector.load %arg1[%c0, %c0_0] : memref<8x16xf32, #tpu.memory_space<vmem>>, vector<8x16xf32>
    %1 = arith.truncf %0 : vector<8x16xf32> to vector<8x16xbf16>
    %c0_1 = arith.constant 0 : index
    %c0_2 = arith.constant 0 : index
    %2 = vector.load %arg2[%c0_1, %c0_2] : memref<16x128xbf16, #tpu.memory_space<vmem>>, vector<16x128xbf16>
    %cst = arith.constant dense<0.000000e+00> : vector<8x128xf32>
    %3 = tpu.matmul %1, %2, %cst {dimension_numbers = #tpu.dot_dimension_numbers<[1], [0], [0], [1], [0, 0, 1, 1], [], []>} : vector<8x16xbf16>, vector<16x128xbf16>, vector<8x128xf32> -> vector<8x128xf32>
    %c0_3 = arith.constant 0 : index
    %c0_4 = arith.constant 0 : index
    %4 = vector.load %arg3[%c0_3, %c0_4] : memref<1x128xf32, #tpu.memory_space<vmem>>, vector<1x128xf32>
    %5 = vector.broadcast %4 : vector<1x128xf32> to vector<8x128xf32>
    %6 = arith.addf %3, %5 : vector<8x128xf32>
    %cst_5 = arith.constant 2.000000e+01 : f32
    %7 = vector.broadcast %cst_5 : f32 to vector<8x128xf32>
    %8 = arith.cmpf ogt, %6, %7 : vector<8x128xf32>
    %9 = math.exp %6 : vector<8x128xf32>
    %10 = math.log1p %9 : vector<8x128xf32>
    %11 = arith.select %8, %6, %10 : vector<8x128xi1>, vector<8x128xf32>
    %12 = arith.truncf %11 : vector<8x128xf32> to vector<8x128xbf16>
    %c0_6 = arith.constant 0 : index
    %c0_7 = arith.constant 0 : index
    %13 = vector.load %arg4[%c0_6, %c0_7] : memref<128x128xbf16, #tpu.memory_space<vmem>>, vector<128x128xbf16>
    %cst_8 = arith.constant dense<0.000000e+00> : vector<8x128xf32>
    %14 = tpu.matmul %12, %13, %cst_8 {dimension_numbers = #tpu.dot_dimension_numbers<[1], [0], [0], [1], [0, 0, 1, 1], [], []>} : vector<8x128xbf16>, vector<128x128xbf16>, vector<8x128xf32> -> vector<8x128xf32>
    %c0_9 = arith.constant 0 : index
    %c0_10 = arith.constant 0 : index
    %15 = vector.load %arg5[%c0_9, %c0_10] : memref<1x128xf32, #tpu.memory_space<vmem>>, vector<1x128xf32>
    %16 = vector.broadcast %15 : vector<1x128xf32> to vector<8x128xf32>
    %17 = arith.addf %14, %16 : vector<8x128xf32>
    %cst_11 = arith.constant 2.000000e+01 : f32
    %18 = vector.broadcast %cst_11 : f32 to vector<8x128xf32>
    %19 = arith.cmpf ogt, %17, %18 : vector<8x128xf32>
    %20 = math.exp %17 : vector<8x128xf32>
    %21 = math.log1p %20 : vector<8x128xf32>
    %22 = arith.select %19, %17, %21 : vector<8x128xi1>, vector<8x128xf32>
    %23 = arith.truncf %22 : vector<8x128xf32> to vector<8x128xbf16>
    %c0_12 = arith.constant 0 : index
    %c0_13 = arith.constant 0 : index
    %24 = vector.load %arg6[%c0_12, %c0_13] : memref<128x128xbf16, #tpu.memory_space<vmem>>, vector<128x128xbf16>
    %cst_14 = arith.constant dense<0.000000e+00> : vector<8x128xf32>
    %25 = tpu.matmul %23, %24, %cst_14 {dimension_numbers = #tpu.dot_dimension_numbers<[1], [0], [0], [1], [0, 0, 1, 1], [], []>} : vector<8x128xbf16>, vector<128x128xbf16>, vector<8x128xf32> -> vector<8x128xf32>
    %c0_15 = arith.constant 0 : index
    %c0_16 = arith.constant 0 : index
    %26 = vector.load %arg7[%c0_15, %c0_16] : memref<1x128xf32, #tpu.memory_space<vmem>>, vector<1x128xf32>
    %27 = vector.broadcast %26 : vector<1x128xf32> to vector<8x128xf32>
    %28 = arith.addf %25, %27 : vector<8x128xf32>
    %29 = math.tanh %28 : vector<8x128xf32>
    %c0_17 = arith.constant 0 : index
    %c0_18 = arith.constant 0 : index
    %30 = vector.load %arg8[%c0_17, %c0_18] : memref<8x128xf32, #tpu.memory_space<vmem>>, vector<8x128xf32>
    tpu.vector_store %arg8[%c0_17, %c0_18], %29 {strides = array<i32>} : memref<8x128xf32, #tpu.memory_space<vmem>>, vector<8x128xf32>,
    return
  }
  func.func @transform_0(%arg0: i32) -> (i32, i32) {
    %c0_i32 = arith.constant 0 : i32
    %c0_i32_0 = arith.constant 0 : i32
    return %arg0, %c0_i32 : i32, i32
  }
  func.func @transform_1(%arg0: i32) -> (i32, i32) {
    %c0_i32 = arith.constant 0 : i32
    %c0_i32_0 = arith.constant 0 : i32
    %c0_i32_1 = arith.constant 0 : i32
    return %c0_i32, %c0_i32_0 : i32, i32
  }
  func.func @transform_2(%arg0: i32) -> (i32, i32) {
    %c0_i32 = arith.constant 0 : i32
    %c0_i32_0 = arith.constant 0 : i32
    %c0_i32_1 = arith.constant 0 : i32
    return %c0_i32, %c0_i32_0 : i32, i32
  }
  func.func @transform_3(%arg0: i32) -> (i32, i32) {
    %c0_i32 = arith.constant 0 : i32
    %c0_i32_0 = arith.constant 0 : i32
    %c0_i32_1 = arith.constant 0 : i32
    return %c0_i32, %c0_i32_0 : i32, i32
  }
  func.func @transform_4(%arg0: i32) -> (i32, i32) {
    %c0_i32 = arith.constant 0 : i32
    %c0_i32_0 = arith.constant 0 : i32
    %c0_i32_1 = arith.constant 0 : i32
    return %c0_i32, %c0_i32_0 : i32, i32
  }
  func.func @transform_5(%arg0: i32) -> (i32, i32) {
    %c0_i32 = arith.constant 0 : i32
    %c0_i32_0 = arith.constant 0 : i32
    %c0_i32_1 = arith.constant 0 : i32
    return %c0_i32, %c0_i32_0 : i32, i32
  }
  func.func @transform_6(%arg0: i32) -> (i32, i32) {
    %c0_i32 = arith.constant 0 : i32
    %c0_i32_0 = arith.constant 0 : i32
    %c0_i32_1 = arith.constant 0 : i32
    return %c0_i32, %c0_i32_0 : i32, i32
  }
  func.func @transform_7(%arg0: i32) -> (i32, i32) {
    %c0_i32 = arith.constant 0 : i32
    %c0_i32_0 = arith.constant 0 : i32
    return %arg0, %c0_i32 : i32, i32
  }
}

</mosaic_0001>

<bundles_post_ra>
// kernel: tpu_custom_call.1
= control target key start
LH: loop header
LB: loop body
LE: loop exit
PB: predicated region body
PF: predicated region fallthrough
CT: control target
= control target key end

     0   :  { %12 = vsyncpa [#allocation3], 0  ;;  %s1102_s0 = inlined_call_operand.vmem [shape: f32[20,16], index: 0, kind: input, shape index: {}]   ;;  %s1103_s1 = inlined_call_operand.vmem [shape: bf16[16,128], index: 1, kind: input, shape index: {}]   ;;  %s1104_s2 = inlined_call_operand.vmem [shape: f32[1,128], index: 2, kind: input, shape index: {}]   ;;  %s1105_s3 = inlined_call_operand.hbm [shape: bf16[128,128], index: 3, kind: input, shape index: {}]   ;;  %s1106_s4 = inlined_call_operand.vmem [shape: f32[1,128], index: 4, kind: input, shape index: {}]   ;;  %s1107_s5 = inlined_call_operand.hbm [shape: bf16[128,128], index: 5, kind: input, shape index: {}]   ;;  %s1108_s6 = inlined_call_operand.vmem [shape: f32[1,128], index: 6, kind: input, shape index: {}]   ;;  %s1109_s7 = inlined_call_operand.hbm [shape: f32[20,128], index: 7, kind: output, shape index: {}]  }
   0x1   :  { %13 = vsyncpa [#allocation6], 0 }
   0x2   :  { %14 = vsyncpa [#allocation4], 0 }
   0x3   :  { %16 = vsyncpa [#allocation4 + $0x1], 0  ;;  %s980_s24 = smov 0   ;;  %s982_s25 = smov 0  }
   0x4   :  { %s984_s26 = smov 0   ;;  %s986_s27 = smov 0  }
   0x5 LB: > { %s1001_s28 = sadd.s32 4294967295, %s934_s27   ;;  %s629_s29 = sadd.s32 4294967294, %s934_s27   ;;  %s934_s27 = sphi %s986_s27, %s1116_s27   ;;  %s930_s26 = sphi %s984_s26, %s1115_s26   ;;  %s926_s25 = sphi %s982_s25, %s1114_s25   ;;  %s922_s24 = sphi %s980_s24, %s1113_s24  }
   0x6   : > { %s1005_s30 = sadd.s32 1, %s934_s27   ;;  %s181_s8 = sadd.s32 1, %s930_s26 }
   0x7   : > { %s178_s9 = ssub.s32 %s934_s27, %s1005_s30  ;;  %p191_p0 = scmp.ne.s32.totalorder %s930_s26, %s926_s25 }
   0x8   : > { %p179_p1 = scmp.eq.s32.totalorder %s178_s9, 0  ;;  %p192_p2 = scmp.eq.s32.totalorder %s1001_s28, 2 }
   0x9   : > { %p197_p3 = scmp.ne.s32.totalorder %s926_s25, %s922_s24  ;;  %p198_p4 = scmp.eq.s32.totalorder %s629_s29, 2 }
   0xa   : > { %s1016_s10 = scalar_select %p179_p1, %s930_s26, %s181_s8  }
   0xb   : > { %p1018_p5 = por %p192_p2, %p191_p0  ;;  %p1022_p6 = por %p198_p4, %p197_p3 }
   0xc   : > { %p630_p7 = scmp.ge.s32.totalorder %s934_s27, 1  ;;  %p205_p8 = scmp.lt.s32.totalorder %s934_s27, 4 }
   0xd   : > { %p750_p9 = scmp.eq.s32.totalorder %s1001_s28, 0  ;;  %s222_s16 = sshll.u32 %s1105_s3, 4  ;;  %s223_s16 = int_to_ptr.hbm [resolvable:$true] %s222_s16 }
   0xe   : > { %p1029_p10 = pnand %p630_p7, %p205_p8  ;;  %s936_s17 = smov [#allocation2]  }
   0xf   : > { %s224_s18 = sshll.u32 %s936_s17, 4  ;;  %s239_s21 = sshll.u32 %s1107_s5, 4  ;;  %s225_s18 = int_to_ptr.vmem [resolvable:$true] %s224_s18  ;;  %s240_s21 = int_to_ptr.hbm [resolvable:$true] %s239_s21 }
  0x10   : > { %p739_p11 = pneg %p1029_p10  ;;  %s937_s22 = smov 64  }
  0x11   : > { %s938_s23 = smov 4   ;;  %s939_s29 = smov [#allocation5]  }
  0x12   : > { %p740_p12 = pnand %p750_p9, %p739_p11  ;;  %s241_s8 = sshll.u32 %s939_s29, 4  ;;  %s242_s8 = int_to_ptr.vmem [resolvable:$true] %s241_s8 }
  0x13   : > { %267 = sbr.rel (%p1029_p10) target bundleno = 484 (0x1e4), region = 48 }
  0x14   : > { %742 = dma.hbm_to_vmem [thread:$0]  (!%p740_p12), %s223_s16, 1024, %s225_s18, [#allocation3], %s937_s22, %s937_s22, %s938_s23  }
  0x15   : > { %745 = dma.hbm_to_vmem [thread:$0]  (!%p740_p12), %s240_s21, 1024, %s242_s8, [#allocation6], %s937_s22, %s937_s22, %s938_s23  }
  0x18   : > { %909 = dma.done.wait (%p750_p9), [#allocation3], 1024  }
  0x19   : > { %911 = vsyncadd (%p750_p9), [#allocation3], 4294966272 }
  0x1a   : > { %913 = dma.done.wait (%p750_p9), [#allocation6], 1024  }
  0x1b   : > { %915 = vsyncadd (%p750_p9), [#allocation6], 4294966272  ;;  %p304_p13 = scmp.lt.s32.totalorder %s1001_s28, 2  ;;  %v712_v0 = vld [vmem:[%s1103_s1] sm:$0xff]  ;;  %v720_v2 = vld [vmem:[#allocation2 + $0x38] sm:$0xff]  ;;  %vm323_vm0 = vcmask 130048  }
  0x1c   : > { %334 = vmatpush.bf16.msra.mxu0 %v712_v0  ;;  %422 = vmatpush.bf16.msra.mxu1 %v720_v2  ;;  %v719_v4 = vld [vmem:[#allocation2 + $0x30] sm:$0xff]  ;;  %v718_v5 = vld [vmem:[#allocation2 + $0x28] sm:$0xff]  ;;  %v717_v6 = vld [vmem:[#allocation2 + $0x20] sm:$0xff]  ;;  %s301_s23 = sand.u32 1, %s926_s25   ;;  %s884_s8 = scalar_lea.hbm %s1109_s7, 24 }
  0x1d   : > { %s305_s9 = scalar_select %p304_p13, %s1001_s28, 2  ;;  %v716_v7 = vld [vmem:[#allocation2 + $0x18] sm:$0xff]  ;;  %v715_v8 = vld [vmem:[#allocation2 + $0x10] sm:$0xff]  ;;  %v714_v9 = vld [vmem:[#allocation2 + $0x8] sm:$0xff] }
  0x1e   : > { %v713_v10 = vld [vmem:[#allocation2] sm:$0xff]  ;;  %v728_v11 = vld [vmem:[#allocation5 + $0x38] sm:$0xff]  ;;  %v727_v28 = vld [vmem:[#allocation5 + $0x30] sm:$0xff]  ;;  %s533_s20 = scalar_lea.sflag [#allocation4], %s301_s23 }
  0x1f   : > { %s638_s14 = sshll.u32 %s305_s9, 3  ;;  %v791_v12 = vld [vmem:[%s1104_s2] ss:$0 sm:$0xff]  ;;  %517 = vmatpush.bf16.msra.mxu2 %v728_v11  ;;  %v726_v29 = vld [vmem:[#allocation5 + $0x28] sm:$0xff]  ;;  %v724_v31 = vld [vmem:[#allocation5 + $0x18] sm:$0xff]  ;;  %s637_s9 = sshll.u32 %s301_s23, 3 }
  0x20   : > { %s307_s16 = scalar_lea.vmem %s1102_s0, %s638_s14  ;;  %423 = vmatpush.bf16.msra.mxu1 %v719_v4  ;;  %v725_v30 = vld [vmem:[#allocation5 + $0x20] sm:$0xff]  ;;  %v723_v32 = vld [vmem:[#allocation5 + $0x10] sm:$0xff]  ;;  %v722_v33 = vld [vmem:[#allocation5 + $0x8] sm:$0xff]  ;;  %s709_s14 = sshll.u32 %s1001_s28, 3 }
  0x21   : > { %v309_v1 = vld [vmem:[%s307_s16] sm:$0xff]  ;;  %s543_s16 = scalar_lea.hbm %s1109_s7, %s709_s14  ;;  %s303_s17 = scalar_lea.vmem [#allocation7], %s637_s9 }
  0x22   : > { %v310_v3 = vpack.c.bf16 %v309_v1, %v309_v1  ;;  %v721_v34 = vld [vmem:[#allocation5] sm:$0xff]  ;;  %s545_s18 = sshll.u32 %s303_s17, 4  ;;  %s547_s19 = sshll.u32 %s543_s16, 4  ;;  %s546_s18 = int_to_ptr.vmem [resolvable:$true] %s545_s18  ;;  %s548_s19 = int_to_ptr.hbm [resolvable:$true] %s547_s19 }
  0x23   : > { %518 = vmatpush.bf16.msra.mxu2 %v727_v28  ;;  %v792_v35 = vld [vmem:[%s1106_s4] ss:$0 sm:$0xff]  ;;  %s878_s21 = sshra.s32 %s548_s19, 4  ;;  %s879_s21 = int_to_ptr.hbm [resolvable:$true] %s878_s21 }
  0x24   : > { %643 = vmatmul.msk.bf16.vlgmr.msra.gmra.mxu0 %vm323_vm0, %v310_v3  ;;  %424 = vmatpush.bf16.msra.mxu1 %v718_v5  ;;  %v793_v51 = vld [vmem:[%s1108_s6] ss:$0 sm:$0xff]  ;;  %s880_s28 = scalar_lea.hbm %s879_s21, 8  ;;  %p885_p3 = scmp.lt.s32.totalorder %s879_s21, %s1109_s7 }
  0x25   : > { %p881_p0 = scmp.ne.s32.totalorder %s879_s21, %s880_s28  ;;  %p886_p4 = scmp.lt.s32.totalorder %s884_s8, %s880_s28 }
  0x27   : > { %519 = vmatpush.bf16.msra.mxu2 %v726_v29  ;;  %p882_p1 = pnand %p881_p0, %p1018_p5  ;;  %p887_p7 = por %p886_p4, %p885_p3 }
  0x28   : > { %425 = vmatpush.bf16.msra.mxu1 %v717_v6 }
  0x29   : > { %p883_p2 = pneg %p882_p1 }
  0x2b   : > { %520 = vmatpush.bf16.msra.mxu2 %v725_v30  ;;  %p888_p8 = pnand %p887_p7, %p883_p2 }
  0x2c   : > { %426 = vmatpush.bf16.msra.mxu1 %v716_v7 }
  0x2f   : > { %521 = vmatpush.bf16.msra.mxu2 %v724_v31 }
  0x30   : > { %427 = vmatpush.bf16.msra.mxu1 %v715_v8 }
  0x33   : > { %522 = vmatpush.bf16.msra.mxu2 %v723_v32 }
  0x34   : > { %428 = vmatpush.bf16.msra.mxu1 %v714_v9 }
  0x37   : > { %523 = vmatpush.bf16.msra.mxu2 %v722_v33 }
  0x38   : > { %429 = vmatpush.bf16.msra.mxu1 %v713_v10 }
  0x3b   : > { %524 = vmatpush.bf16.msra.mxu2 %v721_v34 }
  0xa1   : > { %v336_v13 = vpop.f32.mrf.mxu0 }
  0xa2   : > { %v337_v14 = vadd.f32 %v791_v12, %v336_v13 }
  0xa4   : > { %v341_v15 = vmul.f32 1.442695, %v337_v14  ;;  %vm340_vm2 = vcmp.gt.f32.partialorder %v337_v14, 20.0 }
  0xa6   : > { %794 = vpow2.f32 %v341_v15 }
  0xa9   : > { %v338_v16 = vpop.f32.mrf.mxu0 }
  0xac   : > { %v795_v17 = vpop.eup %794 }
  0xad   : > { %v343_v18 = vadd.f32 1.0, %v795_v17  ;;  %v346_v19 = vmul.f32 -0.5, %v795_v17  ;;  %v349_v21 = vand.u32 2147483647, %v795_v17 }
  0xaf   : > { %796 = vlog2.f32 %v343_v18  ;;  %v347_v20 = vadd.f32 1.0, %v346_v19  ;;  %vm350_vm1 = vcmp.lt.f32.partialorder %v349_v21, 0.0004427343 }
  0xb1   : > { %v348_v24 = vmul.f32 %v795_v17, %v347_v20 }
  0xb5   : > { %v797_v22 = vpop.eup %796 }
  0xb6   : > { %v345_v23 = vmul.f32 0.6931472, %v797_v22 }
  0xb8   : > { %v351_v25 = vsel %vm350_vm1, %v348_v24, %v345_v23 }
  0xb9   : > { %v352_v26 = vsel %vm340_vm2, %v337_v14, %v351_v25 }
  0xba   : > { %v353_v27 = vpack.c.bf16 %v352_v26, %v352_v26 }
  0xbc   : > { %430 = vmatmul.bf16.vlgmr.msra.gmra.mxu1 %v353_v27 }
 0x139   : > { %v431_v36 = vpop.f32.mrf.mxu1 }
 0x13a   : > { %v432_v37 = vadd.f32 %v792_v35, %v431_v36 }
 0x13c   : > { %v436_v38 = vmul.f32 1.442695, %v432_v37  ;;  %vm435_vm4 = vcmp.gt.f32.partialorder %v432_v37, 20.0 }
 0x13e   : > { %798 = vpow2.f32 %v436_v38 }
 0x141   : > { %v433_v39 = vpop.f32.mrf.mxu1 }
 0x144   : > { %v799_v40 = vpop.eup %798 }
 0x145   : > { %v438_v41 = vadd.f32 1.0, %v799_v40  ;;  %v441_v42 = vmul.f32 -0.5, %v799_v40  ;;  %v444_v44 = vand.u32 2147483647, %v799_v40 }
 0x147   : > { %800 = vlog2.f32 %v438_v41  ;;  %v442_v43 = vadd.f32 1.0, %v441_v42  ;;  %vm445_vm3 = vcmp.lt.f32.partialorder %v444_v44, 0.0004427343 }
 0x149   : > { %v443_v47 = vmul.f32 %v799_v40, %v442_v43 }
 0x14d   : > { %v801_v45 = vpop.eup %800 }
 0x14e   : > { %v440_v46 = vmul.f32 0.6931472, %v801_v45 }
 0x150   : > { %v446_v48 = vsel %vm445_vm3, %v443_v47, %v440_v46 }
 0x151   : > { %v447_v49 = vsel %vm435_vm4, %v432_v37, %v446_v48 }
 0x152   : > { %v448_v50 = vpack.c.bf16 %v447_v49, %v447_v49 }
 0x154   : > { %525 = vmatmul.bf16.vlgmr.msra.gmra.mxu2 %v448_v50 }
 0x1d7   : > { %v526_v52 = vpop.f32.mrf.mxu2 }
 0x1d8   : > { %v527_v53 = vadd.f32 %v793_v51, %v526_v52 }
 0x1da   : > { %802 = vtanh.f32 %v527_v53 }
 0x1df   : > { %v528_v54 = vpop.f32.mrf.mxu2 }
 0x1e0   : > { %v803_v55 = vpop.eup %802 }
 0x1e1   : > { %531 = vst [vmem:[%s303_s17] sm:$0xff] %v803_v55 }
 0x1e2   : > { %891 = shalt.err (!%p888_p8)
}
 0x1e3   : > { %737 = dma.vmem_to_hbm [thread:$0]  (%p1018_p5), %s546_s18, 128, %s548_s19, %s533_s20  }
 0x1e4 PF: > { %p754_p9 = scmp.ge.s32.totalorder %s934_s27, 2  ;;  %s559_s23 = sand.u32 1, %s922_s24  }
 0x1e5   : > { %s560_s15 = scalar_lea.sflag [#allocation4], %s559_s23 }
 0x1e6   : > { %p747_p10 = pnand %p754_p9, %p1022_p6 }
 0x1e8   : > { %p748_p11 = pneg %p747_p10 }
 0x1ea   : > { %917 = dma.done.wait (%p748_p11), %s560_s15, 128  }
 0x1eb   : > { %919 = vsyncadd (%p748_p11), %s560_s15, 4294967168  ;;  %p19_p12 = scmp.ge.s32.totalorder %s1005_s30, 5   ;;  %s1113_s24 = smov %s926_s25 }
 0x1ec   : > { %s1114_s25 = smov %s930_s26  ;;  %s1115_s26 = smov %s1016_s10 }
 0x1ed   : > { %s1116_s27 = smov %s1005_s30  ;;  %21 = sbr.rel (!%p19_p12) target bundleno = 5 (0x5), region = 92 }
 0x1f2   :  { %566 = vsyncpa [#allocation3], 1 }
 0x1f3   :  { %568 = vsyncpa [#allocation3 + $0x1], 1 }
 0x1f4   :  { %569 = vsyncpa [#allocation6], 1 }
 0x1f5   :  { %570 = vsyncpa [#allocation4], 1 }
 0x1f6   :  { %572 = vsyncpa [#allocation4 + $0x1], 1 }

</bundles_post_ra>
